<compile_context>
chip_gen: v5e
topology: v5e:2x2
jax: 0.10.0
libtpu: 0.0.40
codegen_flags: <defaults>
</compile_context>

<pallas_src>
import math
import jax
import jax.numpy as jnp
from jax import lax
from jax.experimental import pallas as pl
from jax.experimental.pallas import tpu as pltpu

LEN_AFTER_AE = 128
BN_EPS = 1e-5
_INV_SQRT2 = 1.0 / math.sqrt(2.0)


def _round_up(n, m):
    return -(-n // m) * m


def _gelu_erf(x):
    # exact erf-based gelu, matching the reference `gelu` function
    return x * 0.5 * (1.0 + lax.erf(x * _INV_SQRT2))


def ae1_kernel(x_ref, w_ref, vec_ref, out_ref):
    # x_ref:   [TB, V]  bf16   (batch tile)
    # w_ref:   [V, Hp]  bf16   (resident weight, Hp = 128-padded hidden)
    # vec_ref: [8, Hp]  f32    row 0: linear bias, row 1: bn scale, row 2: bn shift
    h = jnp.dot(x_ref[...], w_ref[...], preferred_element_type=jnp.float32)
    h = h + vec_ref[0:1, :]                         # linear bias
    g = _gelu_erf(h)                                # f32 epilogue (v5e-safe)
    y = g * vec_ref[1:2, :] + vec_ref[2:3, :]       # folded BatchNorm (eval stats)
    # TODO(synk): dropout(p=0.3) omitted — identity under eval-mode semantics.
    out_ref[...] = y.astype(out_ref.dtype)


def ae1_forward(x, params, *, tile_b=256):
    """Runs the Pallas kernel for AE1.forward. Returns (X, X_AE)."""
    B, V = x.shape
    H = params["hidden"]
    Hp = params["w_t"].shape[1]

    # Batch tile: large enough to pipeline, never larger than the padded batch.
    # VMEM footprint (double-buffered x/out + resident w/vecs) stays far below
    # v7x's 64 MiB budget even at TB=256: 2*(TB*V*2 + TB*Hp*4) + V*Hp*2 + 8*Hp*4.
    TB = min(tile_b, _round_up(B, 8))
    Bp = _round_up(B, TB)

    x_p = x if Bp == B else jnp.pad(x, ((0, Bp - B), (0, 0)))
    x_bf = x_p.astype(jnp.bfloat16)                 # halve HBM traffic on x

    out = pl.pallas_call(
        ae1_kernel,
        out_shape=jax.ShapeDtypeStruct((Bp, Hp), jnp.float32),
        grid_spec=pltpu.PrefetchScalarGridSpec(
            num_scalar_prefetch=0,
            grid=(Bp // TB,),
            in_specs=[
                pl.BlockSpec((TB, V), lambda i: (i, 0)),   # x: tiled over batch
                pl.BlockSpec((V, Hp), lambda i: (0, 0)),   # weight: resident
                pl.BlockSpec((8, Hp), lambda i: (0, 0)),   # bias/scale/shift slab
            ],
            out_specs=pl.BlockSpec((TB, Hp), lambda i: (i, 0)),
        ),
        compiler_params=pltpu.CompilerParams(
            dimension_semantics=("parallel",),             # megacore over batch
            vmem_limit_bytes=48 * 1024 * 1024,
        ),
    )(x_bf, params["w_t"], params["vecs"])

    out = out[:B, :H]       # drop batch padding + lane padding (Hp -> H)
    x_ae = 0                # matches `X_AE = 0` in the PyTorch forward
    return out, x_ae


def init_params(key, vector_size):
    """Deterministic init matching AE1.__init__ shapes (l1 + bn1 only; the
    other submodules are unused in forward). BN folded into scale/shift;
    hidden dim padded to a multiple of 128 for lane-dense stores."""
    hidden = (vector_size + LEN_AFTER_AE) // 2
    hp = _round_up(hidden, 128)

    k_w, k_b = jax.random.split(key)
    bound = 1.0 / math.sqrt(vector_size)
    # torch Linear weight is [out, in]; store transposed [in, out] for the kernel
    w = jax.random.uniform(k_w, (hidden, vector_size), jnp.float32, -bound, bound)
    b = jax.random.uniform(k_b, (hidden,), jnp.float32, -bound, bound)

    # BatchNorm1d defaults from __init__: gamma=1, beta=0, mean=0, var=1
    gamma = jnp.ones((hidden,), jnp.float32)
    beta = jnp.zeros((hidden,), jnp.float32)
    running_mean = jnp.zeros((hidden,), jnp.float32)
    running_var = jnp.ones((hidden,), jnp.float32)

    bn_scale = gamma * lax.rsqrt(running_var + BN_EPS)
    bn_shift = beta - running_mean * bn_scale

    # Pad hidden dim with zeros -> padded output columns are exactly 0.
    w_t = jnp.zeros((vector_size, hp), jnp.float32).at[:, :hidden].set(w.T)
    vecs = jnp.zeros((8, hp), jnp.float32)
    vecs = vecs.at[0, :hidden].set(b)
    vecs = vecs.at[1, :hidden].set(bn_scale)
    vecs = vecs.at[2, :hidden].set(bn_shift)

    return {
        "hidden": hidden,
        "w_t": w_t.astype(jnp.bfloat16),   # [V, Hp] bf16 (MXU operand)
        "vecs": vecs,                      # [8, Hp] f32  (bias / scale / shift)
    }


def _reference(x, params):
    """Plain-JAX reference (same bf16-rounded MXU operands, f32 accumulate)."""
    H = params["hidden"]
    xb = x.astype(jnp.bfloat16).astype(jnp.float32)
    wb = params["w_t"].astype(jnp.float32)[:, :H]
    vec = params["vecs"]
    h = xb @ wb + vec[0, :H]
    g = _gelu_erf(h)
    return g * vec[1, :H] + vec[2, :H]


if __name__ == "__main__":
    key = jax.random.PRNGKey(0)
    k_x, k_p = jax.random.split(key)

    batch = 8
    vector_size = 32            # -> hidden = (32 + 128) // 2 = 80
    x = jax.random.normal(k_x, (batch, vector_size), jnp.float32)
    params = init_params(k_p, vector_size)

    out, x_ae = ae1_forward(x, params)
    out = jax.block_until_ready(out)

    ref = _reference(x, params)
    assert out.shape == (batch, (vector_size + LEN_AFTER_AE) // 2)
    assert jnp.allclose(out, ref, atol=1e-3, rtol=1e-3)
    assert x_ae == 0

    print("KERNEL_OK")
</pallas_src>

<mosaic_0001>
module attributes {stable_mosaic.version = 11 : i64} {
  func.func @ae1_kernel(%arg0: i32, %arg1: memref<8x32xbf16, #tpu.memory_space<vmem>>, %arg2: memref<32x128xbf16, #tpu.memory_space<vmem>>, %arg3: memref<8x128xf32, #tpu.memory_space<vmem>>, %arg4: memref<8x128xf32, #tpu.memory_space<vmem>>) attributes {dimension_semantics = [#tpu.dimension_semantics<parallel>], iteration_bounds = array<i64: 1>, scalar_prefetch = 0 : i64, scratch_operands = 0 : i64, tpu.core_type = #tpu.core_type<tc>, window_params = [{transform_indices = @transform_0, window_bounds = array<i64: 8, 32>}, {pipeline_mode = #tpu.pipeline_mode<synchronous>, transform_indices = @transform_1, window_bounds = array<i64: 32, 128>}, {pipeline_mode = #tpu.pipeline_mode<synchronous>, transform_indices = @transform_2, window_bounds = array<i64: 8, 128>}, {transform_indices = @transform_3, window_bounds = array<i64: 8, 128>}]} {
    %c0 = arith.constant 0 : index
    %c0_0 = arith.constant 0 : index
    %0 = vector.load %arg1[%c0, %c0_0] : memref<8x32xbf16, #tpu.memory_space<vmem>>, vector<8x32xbf16>
    %c0_1 = arith.constant 0 : index
    %c0_2 = arith.constant 0 : index
    %1 = vector.load %arg2[%c0_1, %c0_2] : memref<32x128xbf16, #tpu.memory_space<vmem>>, vector<32x128xbf16>
    %cst = arith.constant dense<0.000000e+00> : vector<8x128xf32>
    %2 = tpu.matmul %0, %1, %cst {dimension_numbers = #tpu.dot_dimension_numbers<[1], [0], [0], [1], [0, 0, 1, 1], [], []>} : vector<8x32xbf16>, vector<32x128xbf16>, vector<8x128xf32> -> vector<8x128xf32>
    %c0_3 = arith.constant 0 : index
    %c0_4 = arith.constant 0 : index
    %3 = vector.load %arg3[%c0_3, %c0_4] : memref<8x128xf32, #tpu.memory_space<vmem>>, vector<1x128xf32>
    %4 = vector.broadcast %3 : vector<1x128xf32> to vector<8x128xf32>
    %5 = arith.addf %2, %4 : vector<8x128xf32>
    %cst_5 = arith.constant 5.000000e-01 : f32
    %6 = vector.broadcast %cst_5 : f32 to vector<8x128xf32>
    %7 = arith.mulf %5, %6 : vector<8x128xf32>
    %cst_6 = arith.constant 0.707106769 : f32
    %8 = vector.broadcast %cst_6 : f32 to vector<8x128xf32>
    %9 = arith.mulf %5, %8 : vector<8x128xf32>
    %10 = math.erf %9 : vector<8x128xf32>
    %cst_7 = arith.constant 1.000000e+00 : f32
    %11 = vector.broadcast %cst_7 : f32 to vector<8x128xf32>
    %12 = arith.addf %11, %10 : vector<8x128xf32>
    %13 = arith.mulf %7, %12 : vector<8x128xf32>
    %c1 = arith.constant 1 : index
    %c0_8 = arith.constant 0 : index
    %14 = vector.load %arg3[%c1, %c0_8] : memref<8x128xf32, #tpu.memory_space<vmem>>, vector<1x128xf32>
    %15 = vector.broadcast %14 : vector<1x128xf32> to vector<8x128xf32>
    %16 = arith.mulf %13, %15 : vector<8x128xf32>
    %c2 = arith.constant 2 : index
    %c0_9 = arith.constant 0 : index
    %17 = vector.load %arg3[%c2, %c0_9] : memref<8x128xf32, #tpu.memory_space<vmem>>, vector<1x128xf32>
    %18 = vector.broadcast %17 : vector<1x128xf32> to vector<8x128xf32>
    %19 = arith.addf %16, %18 : vector<8x128xf32>
    %c0_10 = arith.constant 0 : index
    %c0_11 = arith.constant 0 : index
    %20 = vector.load %arg4[%c0_10, %c0_11] : memref<8x128xf32, #tpu.memory_space<vmem>>, vector<8x128xf32>
    tpu.vector_store %arg4[%c0_10, %c0_11], %19 {strides = array<i32>} : memref<8x128xf32, #tpu.memory_space<vmem>>, vector<8x128xf32>,
    return
  }
  func.func @transform_0(%arg0: i32) -> (i32, i32) {
    %c0_i32 = arith.constant 0 : i32
    %c0_i32_0 = arith.constant 0 : i32
    return %arg0, %c0_i32 : i32, i32
  }
  func.func @transform_1(%arg0: i32) -> (i32, i32) {
    %c0_i32 = arith.constant 0 : i32
    %c0_i32_0 = arith.constant 0 : i32
    %c0_i32_1 = arith.constant 0 : i32
    return %c0_i32, %c0_i32_0 : i32, i32
  }
  func.func @transform_2(%arg0: i32) -> (i32, i32) {
    %c0_i32 = arith.constant 0 : i32
    %c0_i32_0 = arith.constant 0 : i32
    %c0_i32_1 = arith.constant 0 : i32
    return %c0_i32, %c0_i32_0 : i32, i32
  }
  func.func @transform_3(%arg0: i32) -> (i32, i32) {
    %c0_i32 = arith.constant 0 : i32
    %c0_i32_0 = arith.constant 0 : i32
    return %arg0, %c0_i32 : i32, i32
  }
}

</mosaic_0001>

<bundles_post_ra>
// kernel: tpu_custom_call.1
= control target key start
LH: loop header
LB: loop body
LE: loop exit
PB: predicated region body
PF: predicated region fallthrough
CT: control target
= control target key end

     0   :  { %8 = vsyncpa [#allocation3], 0  ;;  %s327_s0 = inlined_call_operand.hbm [shape: bf16[8,32], index: 0, kind: input, shape index: {}]   ;;  %s328_s1 = inlined_call_operand.hbm [shape: bf16[32,128], index: 1, kind: input, shape index: {}]   ;;  %s329_s2 = inlined_call_operand.hbm [shape: f32[8,128], index: 2, kind: input, shape index: {}]   ;;  %s330_s3 = inlined_call_operand.hbm [shape: f32[8,128], index: 3, kind: output, shape index: {}]  }
   0x1   :  { %9 = vsyncpa [#allocation6], 0  ;;  %s26_s14 = sshll.u32 %s328_s1, 4  ;;  %s27_s14 = int_to_ptr.hbm [resolvable:$true] %s26_s14 }
   0x2   :  { %10 = vsyncpa [#allocation4], 0  ;;  %s289_s15 = smov [#allocation5]   ;;  %s16_s19 = sshll.u32 %s327_s0, 4  ;;  %s17_s19 = int_to_ptr.hbm [resolvable:$true] %s16_s19 }
   0x3   :  { %s28_s16 = sshll.u32 %s289_s15, 4  ;;  %s290_s20 = smov 64   ;;  %s29_s16 = int_to_ptr.vmem [resolvable:$true] %s28_s16 }
   0x4   :  { %s291_s21 = smov 4   ;;  %s292_s22 = smov [#allocation2]  }
   0x5   :  { %34 = dma.hbm_to_vmem [thread:$0]  %s27_s14, 256, %s29_s16, [#allocation6], %s290_s20, %s290_s20, %s291_s21  }
   0x6   :  { %s18_s23 = sshll.u32 %s292_s22, 4  ;;  %s40_s26 = sshll.u32 %s329_s2, 4  ;;  %s19_s23 = int_to_ptr.vmem [resolvable:$true] %s18_s23  ;;  %s41_s26 = int_to_ptr.hbm [resolvable:$true] %s40_s26 }
   0x7   :  { %21 = dma.hbm_to_vmem [thread:$0]  %s17_s19, 64, %s19_s23, [#allocation3]  }
   0x8   :  { %s293_s1 = smov [#allocation7]  }
   0x9   :  { %s42_s27 = sshll.u32 %s293_s1, 4  ;;  %s43_s27 = int_to_ptr.vmem [resolvable:$true] %s42_s27 }
   0xa   :  { %45 = dma.hbm_to_vmem [thread:$0]  %s41_s26, 128, %s43_s27, [#allocation6]  }
   0xb   :  { %283 = dma.done.wait [#allocation3], 64  }
   0xc   :  { %284 = vsyncadd [#allocation3], 4294967232 }
   0xd   :  { %285 = dma.done.wait [#allocation6], 384  }
   0xe   :  { %286 = vsyncadd [#allocation6], 4294966912  ;;  %v175_v0 = vld [vmem:[#allocation5 + $0x8] sm:$0xff]  ;;  %v174_v1 = vld [vmem:[#allocation5] sm:$0xff]  ;;  %vm78_vm0 = vcmask 261120   ;;  %s294_s0 = smov [#allocation8]  }
   0xf   :  { %88 = vmatpush.bf16.msra.mxu0 %v175_v0  ;;  %v59_v2 = vld [vmem:[#allocation2] sm:$0xf]  ;;  %v182_v3 = vld [vmem:[#allocation7] ss:$0 sm:$0xff]  ;;  %v183_v45 = vld [vmem:[#allocation7 + $0x1] ss:$0 sm:$0xff] }
  0x10   :  { %v184_v47 = vld [vmem:[#allocation7 + $0x2] ss:$0 sm:$0xff]  ;;  %s151_s2 = sshll.u32 %s294_s0, 4  ;;  %s153_s30 = sshll.u32 %s330_s3, 4  ;;  %s152_s2 = int_to_ptr.vmem [resolvable:$true] %s151_s2  ;;  %s154_s30 = int_to_ptr.hbm [resolvable:$true] %s153_s30 }
  0x13   :  { %89 = vmatpush.bf16.msra.mxu0 %v174_v1 }
  0x16   :  { %172 = vmatmul.msk.bf16.vlgmr.msra.gmra.mxu0 %vm78_vm0, %v59_v2 }
  0x93   :  { %v91_v4 = vpop.f32.mrf.mxu0 }
  0x94   :  { %v92_v5 = vadd.f32 %v182_v3, %v91_v4 }
  0x96   :  { %v96_v6 = vmul.f32 0.70710677, %v92_v5  ;;  %v95_v43 = vmul.f32 0.5, %v92_v5 }
  0x98   :  { %v97_v7 = vmul.f32 %v96_v6, %v96_v6 }
  0x9a   :  { %v98_v8 = vmin.f32 %v97_v7, 16.0 }
  0x9b   :  { %v93_v9 = vpop.f32.mrf.mxu0 }
  0x9c   :  { %v99_v10 = vmul.f32 2.1237322e-06, %v98_v8  ;;  %v110_v11 = vmul.f32 3.8918573e-05, %v98_v8 }
  0x9e   :  { %v100_v12 = vadd.f32 0.00028619796, %v99_v10  ;;  %v111_v13 = vadd.f32 0.001143296, %v110_v11 }
  0xa0   :  { %v101_v14 = vmul.f32 %v100_v12, %v98_v8  ;;  %v112_v15 = vmul.f32 %v111_v13, %v98_v8 }
  0xa2   :  { %v113_v16 = vadd.f32 0.014752088, %v112_v15  ;;  %v102_v17 = vadd.f32 0.0036580483, %v101_v14 }
  0xa4   :  { %v114_v18 = vmul.f32 %v113_v16, %v98_v8  ;;  %v103_v20 = vmul.f32 %v102_v17, %v98_v8 }
  0xa6   :  { %v115_v19 = vadd.f32 0.112945676, %v114_v18  ;;  %v104_v23 = vadd.f32 0.05243302, %v103_v20 }
  0xa8   :  { %v116_v21 = vmul.f32 %v115_v19, %v98_v8  ;;  %v105_v26 = vmul.f32 %v104_v23, %v98_v8 }
  0xaa   :  { %v117_v22 = vadd.f32 0.4994258, %v116_v21  ;;  %v106_v27 = vadd.f32 0.18741608, %v105_v26 }
  0xac   :  { %v118_v24 = vmul.f32 %v117_v22, %v98_v8  ;;  %v107_v29 = vmul.f32 %v106_v27, %v98_v8 }
  0xae   :  { %v119_v25 = vadd.f32 1.0, %v118_v24  ;;  %v108_v33 = vadd.f32 1.1283791, %v107_v29 }
  0xb0   :  { %185 = vrcp.f32 %v119_v25  ;;  %v131_v32 = vand.u32 2147483648, %v119_v25  ;;  %v129_v35 = vand.u32 2147483647, %v119_v25  ;;  %vm125_vm2 = vweird.f32 %v119_v25 }
  0xb1   :  { %v109_v38 = vmul.f32 %v108_v33, %v96_v6 }
  0xb2   :  { %v132_v37 = vor.u32 1.1754944e-38, %v131_v32  ;;  %vm130_vm4 = vcmp.eq.f32.partialorder %v129_v35, 8.507059e+37 }
  0xb6   :  { %v186_v28 = vpop.eup %185 }
  0xb7   :  { %v121_v30 = vmul.f32 %v186_v28, %v119_v25  ;;  %vm126_vm1 = vweird.f32 %v186_v28 }
  0xb8   :  { %vm127_vm3 = vmor %vm125_vm2, %vm126_vm1 }
  0xb9   :  { %v122_v31 = vsub.f32 1.0, %v121_v30 }
  0xbb   :  { %v123_v34 = vmul.f32 %v186_v28, %v122_v31 }
  0xbd   :  { %v124_v36 = vadd.f32 %v186_v28, %v123_v34 }
  0xbf   :  { %v128_v39 = vsel %vm127_vm3, %v186_v28, %v124_v36 }
  0xc0   :  { %v133_v40 = vsel %vm130_vm4, %v132_v37, %v128_v39 }
  0xc1   :  { %v134_v41 = vmul.f32 %v133_v40, %v109_v38 }
  0xc3   :  { %v173_v42 = vclamps-f32 %v134_v41, 1.0 }
  0xc5   :  { %v137_v44 = vadd.f32 1.0, %v173_v42 }
  0xc7   :  { %v138_v46 = vmul.f32 %v137_v44, %v95_v43 }
  0xc9   :  { %v141_v48 = vmul.f32 %v183_v45, %v138_v46 }
  0xcb   :  { %v144_v49 = vadd.f32 %v184_v47, %v141_v48 }
  0xcd   :  { %145 = vst [vmem:[#allocation8] sm:$0xff] %v144_v49 }
  0xce   :  { %156 = dma.vmem_to_hbm [thread:$0]  %s152_s2, 128, %s154_s30, [#allocation4]  }
  0xcf   :  { %287 = dma.done.wait [#allocation4], 128  }
  0xd0   :  { %288 = vsyncadd [#allocation4], 4294967168 }
  0xd1   :  { %161 = vsyncpa [#allocation3], 1 }
  0xd2   :  { %162 = vsyncpa [#allocation6], 1 }
  0xd3   :  { %163 = vsyncpa [#allocation4], 1 }

</bundles_post_ra>
